<compile_context>
chip_gen: v7x
topology: tpu7x:2x2x1
jax: 0.10.0
libtpu: 0.0.40
codegen_flags: <defaults>
</compile_context>

<pallas_src>
import jax
import jax.numpy as jnp
from jax.experimental import pallas as pl
from jax.experimental.pallas import tpu as pltpu

H1_PAD = 128    # fc1 hidden: 100 -> 128
H2_PAD = 64     # fc2 hidden: 50  -> 64
TB_MAX = 2048   # batch tile upper bound (multiple of 16)


def _round_up(n, m):
    return (int(n) + m - 1) // m * m


def _choose_tb(B, tb_max=TB_MAX, min_steps=8):
    """Batch tile: big enough to amortize per-step overhead, small enough to
    keep >= ~min_steps grid steps (v7x: 2 TCs x pipeline depth)."""
    if B <= 16:
        # Single block whose second-to-last dim equals the full array dim
        # (allowed even when not a multiple of 8); avoids block > array.
        return int(B)
    tb = min(tb_max, _round_up(pl.cdiv(B, min_steps), 16))
    tb = min(tb, _round_up(B, 16))
    return max(tb, 16)


def mlp_kernel(x_ref, w1_ref, b1_ref, w2_ref, b2_ref, w3_ref, b3_ref, o_ref):
    # Three fused matmuls + bias + ReLU, all in VMEM; f32 MXU accumulation.
    x = x_ref[...].astype(jnp.bfloat16)                               # cast in VMEM
    h1 = jnp.dot(x, w1_ref[...], preferred_element_type=jnp.float32) + b1_ref[...]
    h1 = jnp.maximum(h1, 0.0).astype(jnp.bfloat16)                    # (TB, 128)
    h2 = jnp.dot(h1, w2_ref[...], preferred_element_type=jnp.float32) + b2_ref[...]
    h2 = jnp.maximum(h2, 0.0).astype(jnp.bfloat16)                    # (TB, 64)
    o_ref[...] = (
        jnp.dot(h2, w3_ref[...], preferred_element_type=jnp.float32) + b3_ref[...]
    ).astype(o_ref.dtype)                                             # (TB, out)


def mlp_forward(x, kparams, tb=None, out_dtype=jnp.float32):
    """x: (B, inputSize) float32. kparams: padded/bf16 kernel params."""
    w1, b1, w2, b2, w3, b3 = (
        kparams["w1"], kparams["b1"],
        kparams["w2"], kparams["b2"],
        kparams["w3"], kparams["b3"],
    )
    B, in_dim = x.shape
    out_dim = w3.shape[1]

    if tb is None:
        tb = _choose_tb(B)
    tb = min(tb, _round_up(B, 16) if B > 16 else B)
    tb = max(tb, 1)

    grid = (int(pl.cdiv(B, tb)),)
    const2 = lambda i: (0, 0)   # weights/biases: DMA'd once, VMEM-resident

    flops = 2 * B * (in_dim * H1_PAD + H1_PAD * H2_PAD + H2_PAD * out_dim)
    bytes_accessed = (
        B * in_dim * 4                                     # f32 input
        + B * out_dim * jnp.dtype(out_dtype).itemsize      # output
        + sum(int(v.size) * v.dtype.itemsize for v in kparams.values())
    )

    out = pl.pallas_call(
        mlp_kernel,
        out_shape=jax.ShapeDtypeStruct((B, out_dim), out_dtype),
        grid_spec=pltpu.PrefetchScalarGridSpec(
            num_scalar_prefetch=0,
            grid=grid,
            in_specs=[
                pl.BlockSpec((tb, in_dim), lambda i: (i, 0)),   # x: pipelined
                pl.BlockSpec((in_dim, H1_PAD), const2),         # w1 (resident)
                pl.BlockSpec((1, H1_PAD), const2),              # b1
                pl.BlockSpec((H1_PAD, H2_PAD), const2),         # w2
                pl.BlockSpec((1, H2_PAD), const2),              # b2
                pl.BlockSpec((H2_PAD, out_dim), const2),        # w3
                pl.BlockSpec((1, out_dim), const2),             # b3
            ],
            out_specs=pl.BlockSpec((tb, out_dim), lambda i: (i, 0)),
        ),
        compiler_params=pltpu.CompilerParams(
            dimension_semantics=("parallel",),   # megacore sharding on v7x
        ),
        cost_estimate=pl.CostEstimate(
            flops=flops, transcendentals=0, bytes_accessed=bytes_accessed),
    )(x, w1, b1, w2, b2, w3, b3)

    return out


def init_params(key, input_size, output_size):
    """Master f32 params matching the PyTorch module's shapes.
       Weights stored pre-transposed as (in, out); biases as (1, out)."""
    k1, k2, k3, k4, k5, k6 = jax.random.split(key, 6)

    def uinit(k, shape, fan_in):
        bound = 1.0 / jnp.sqrt(fan_in)
        return jax.random.uniform(k, shape, jnp.float32, -bound, bound)

    return {
        "w1": uinit(k1, (input_size, 100), input_size),
        "b1": uinit(k2, (1, 100), input_size),
        "w2": uinit(k3, (100, 50), 100),
        "b2": uinit(k4, (1, 50), 100),
        "w3": uinit(k5, (50, output_size), 50),
        "b3": uinit(k6, (1, output_size), 50),
    }


def prepare_kernel_params(params):
    """Zero-pad hidden dims to MXU-friendly sizes and cast weights to bf16.
       Biases stay f32 (added after the f32 accumulation)."""
    def pad_to(a, rows, cols):
        r, c = a.shape
        return jnp.pad(a, ((0, rows - r), (0, cols - c)))

    in_dim = params["w1"].shape[0]
    out_dim = params["w3"].shape[1]
    return {
        "w1": pad_to(params["w1"], in_dim, H1_PAD).astype(jnp.bfloat16),
        "b1": pad_to(params["b1"], 1, H1_PAD),
        "w2": pad_to(params["w2"], H1_PAD, H2_PAD).astype(jnp.bfloat16),
        "b2": pad_to(params["b2"], 1, H2_PAD),
        "w3": pad_to(params["w3"], H2_PAD, out_dim).astype(jnp.bfloat16),
        "b3": params["b3"],
    }


def mlp_reference_f32(x, params):
    """Plain-JAX f32 reference of the original module (unpadded)."""
    h = jnp.maximum(x @ params["w1"] + params["b1"], 0.0)
    h = jnp.maximum(h @ params["w2"] + params["b2"], 0.0)
    return h @ params["w3"] + params["b3"]


def mlp_reference_bf16(x, kp):
    """Plain-JAX reference with the exact padded/bf16 operands the kernel sees."""
    xb = x.astype(jnp.bfloat16)
    h = jnp.maximum(
        jnp.dot(xb, kp["w1"], preferred_element_type=jnp.float32) + kp["b1"], 0.0
    ).astype(jnp.bfloat16)
    h = jnp.maximum(
        jnp.dot(h, kp["w2"], preferred_element_type=jnp.float32) + kp["b2"], 0.0
    ).astype(jnp.bfloat16)
    return jnp.dot(h, kp["w3"], preferred_element_type=jnp.float32) + kp["b3"]


if __name__ == "__main__":
    input_size = 32
    output_size = 16
    batch = 16

    key = jax.random.PRNGKey(0)
    kx, kp = jax.random.split(key)

    x = jax.random.normal(kx, (batch, input_size), dtype=jnp.float32)
    params = init_params(kp, input_size, output_size)
    kparams = prepare_kernel_params(params)

    out = mlp_forward(x, kparams)
    jax.block_until_ready(out)
    assert out.shape == (batch, output_size)

    # Tight check vs a reference using identical bf16/padded operands.
    ref_bf16 = mlp_reference_bf16(x, kparams)
    assert jnp.allclose(out, ref_bf16, atol=1e-3, rtol=1e-3)

    # Loose check vs the original f32 module semantics (bf16 precision loss).
    ref_f32 = mlp_reference_f32(x, params)
    assert jnp.allclose(out, ref_f32, atol=3e-2, rtol=3e-2)

    # Ragged batch: grid > 1 with a masked partial last block (no pad/slice).
    x2 = jax.random.normal(jax.random.PRNGKey(1), (45, input_size), jnp.float32)
    out2 = mlp_forward(x2, kparams, tb=16)
    jax.block_until_ready(out2)
    assert out2.shape == (45, output_size)
    assert jnp.allclose(out2, mlp_reference_f32(x2, params), atol=3e-2, rtol=3e-2)

    # Tiny batch: single block equal to the full (non-multiple-of-8) array.
    x3 = jax.random.normal(jax.random.PRNGKey(2), (13, input_size), jnp.float32)
    out3 = mlp_forward(x3, kparams)
    jax.block_until_ready(out3)
    assert out3.shape == (13, output_size)
    assert jnp.allclose(out3, mlp_reference_f32(x3, params), atol=3e-2, rtol=3e-2)

    print("KERNEL_OK")
</pallas_src>

<mosaic_0001>
module attributes {stable_mosaic.version = 11 : i64} {
  func.func @mlp_kernel(%arg0: i32, %arg1: memref<16x32xf32, #tpu.memory_space<vmem>>, %arg2: memref<32x128xbf16, #tpu.memory_space<vmem>>, %arg3: memref<1x128xf32, #tpu.memory_space<vmem>>, %arg4: memref<128x64xbf16, #tpu.memory_space<vmem>>, %arg5: memref<1x64xf32, #tpu.memory_space<vmem>>, %arg6: memref<64x16xbf16, #tpu.memory_space<vmem>>, %arg7: memref<1x16xf32, #tpu.memory_space<vmem>>, %arg8: memref<16x16xf32, #tpu.memory_space<vmem>>) attributes {dimension_semantics = [#tpu.dimension_semantics<parallel>], iteration_bounds = array<i64: 1>, scalar_prefetch = 0 : i64, scratch_operands = 0 : i64, tpu.core_type = #tpu.core_type<tc>, window_params = [{transform_indices = @transform_0, window_bounds = array<i64: 16, 32>}, {pipeline_mode = #tpu.pipeline_mode<synchronous>, transform_indices = @transform_1, window_bounds = array<i64: 32, 128>}, {pipeline_mode = #tpu.pipeline_mode<synchronous>, transform_indices = @transform_2, window_bounds = array<i64: 1, 128>}, {pipeline_mode = #tpu.pipeline_mode<synchronous>, transform_indices = @transform_3, window_bounds = array<i64: 128, 64>}, {pipeline_mode = #tpu.pipeline_mode<synchronous>, transform_indices = @transform_4, window_bounds = array<i64: 1, 64>}, {pipeline_mode = #tpu.pipeline_mode<synchronous>, transform_indices = @transform_5, window_bounds = array<i64: 64, 16>}, {pipeline_mode = #tpu.pipeline_mode<synchronous>, transform_indices = @transform_6, window_bounds = array<i64: 1, 16>}, {transform_indices = @transform_7, window_bounds = array<i64: 16, 16>}]} {
    %c0 = arith.constant 0 : index
    %c0_0 = arith.constant 0 : index
    %0 = vector.load %arg1[%c0, %c0_0] : memref<16x32xf32, #tpu.memory_space<vmem>>, vector<16x32xf32>
    %1 = arith.truncf %0 : vector<16x32xf32> to vector<16x32xbf16>
    %c0_1 = arith.constant 0 : index
    %c0_2 = arith.constant 0 : index
    %2 = vector.load %arg2[%c0_1, %c0_2] : memref<32x128xbf16, #tpu.memory_space<vmem>>, vector<32x128xbf16>
    %cst = arith.constant dense<0.000000e+00> : vector<16x128xf32>
    %3 = tpu.matmul %1, %2, %cst {dimension_numbers = #tpu.dot_dimension_numbers<[1], [0], [0], [1], [0, 0, 1, 1], [], []>} : vector<16x32xbf16>, vector<32x128xbf16>, vector<16x128xf32> -> vector<16x128xf32>
    %c0_3 = arith.constant 0 : index
    %c0_4 = arith.constant 0 : index
    %4 = vector.load %arg3[%c0_3, %c0_4] : memref<1x128xf32, #tpu.memory_space<vmem>>, vector<1x128xf32>
    %5 = vector.broadcast %4 : vector<1x128xf32> to vector<16x128xf32>
    %6 = arith.addf %3, %5 : vector<16x128xf32>
    %cst_5 = arith.constant 0.000000e+00 : f32
    %7 = vector.broadcast %cst_5 : f32 to vector<16x128xf32>
    %8 = arith.maximumf %6, %7 : vector<16x128xf32>
    %9 = arith.truncf %8 : vector<16x128xf32> to vector<16x128xbf16>
    %c0_6 = arith.constant 0 : index
    %c0_7 = arith.constant 0 : index
    %10 = vector.load %arg4[%c0_6, %c0_7] : memref<128x64xbf16, #tpu.memory_space<vmem>>, vector<128x64xbf16>
    %cst_8 = arith.constant dense<0.000000e+00> : vector<16x64xf32>
    %11 = tpu.matmul %9, %10, %cst_8 {dimension_numbers = #tpu.dot_dimension_numbers<[1], [0], [0], [1], [0, 0, 1, 1], [], []>} : vector<16x128xbf16>, vector<128x64xbf16>, vector<16x64xf32> -> vector<16x64xf32>
    %c0_9 = arith.constant 0 : index
    %c0_10 = arith.constant 0 : index
    %12 = vector.load %arg5[%c0_9, %c0_10] : memref<1x64xf32, #tpu.memory_space<vmem>>, vector<1x64xf32>
    %13 = vector.broadcast %12 : vector<1x64xf32> to vector<16x64xf32>
    %14 = arith.addf %11, %13 : vector<16x64xf32>
    %cst_11 = arith.constant 0.000000e+00 : f32
    %15 = vector.broadcast %cst_11 : f32 to vector<16x64xf32>
    %16 = arith.maximumf %14, %15 : vector<16x64xf32>
    %17 = arith.truncf %16 : vector<16x64xf32> to vector<16x64xbf16>
    %c0_12 = arith.constant 0 : index
    %c0_13 = arith.constant 0 : index
    %18 = vector.load %arg6[%c0_12, %c0_13] : memref<64x16xbf16, #tpu.memory_space<vmem>>, vector<64x16xbf16>
    %cst_14 = arith.constant dense<0.000000e+00> : vector<16x16xf32>
    %19 = tpu.matmul %17, %18, %cst_14 {dimension_numbers = #tpu.dot_dimension_numbers<[1], [0], [0], [1], [0, 0, 1, 1], [], []>} : vector<16x64xbf16>, vector<64x16xbf16>, vector<16x16xf32> -> vector<16x16xf32>
    %c0_15 = arith.constant 0 : index
    %c0_16 = arith.constant 0 : index
    %20 = vector.load %arg7[%c0_15, %c0_16] : memref<1x16xf32, #tpu.memory_space<vmem>>, vector<1x16xf32>
    %21 = vector.broadcast %20 : vector<1x16xf32> to vector<16x16xf32>
    %22 = arith.addf %19, %21 : vector<16x16xf32>
    %c0_17 = arith.constant 0 : index
    %c0_18 = arith.constant 0 : index
    %23 = vector.load %arg8[%c0_17, %c0_18] : memref<16x16xf32, #tpu.memory_space<vmem>>, vector<16x16xf32>
    tpu.vector_store %arg8[%c0_17, %c0_18], %22 {strides = array<i32>} : memref<16x16xf32, #tpu.memory_space<vmem>>, vector<16x16xf32>,
    return
  }
  func.func @transform_0(%arg0: i32) -> (i32, i32) {
    %c0_i32 = arith.constant 0 : i32
    %c0_i32_0 = arith.constant 0 : i32
    return %arg0, %c0_i32 : i32, i32
  }
  func.func @transform_1(%arg0: i32) -> (i32, i32) {
    %c0_i32 = arith.constant 0 : i32
    %c0_i32_0 = arith.constant 0 : i32
    %c0_i32_1 = arith.constant 0 : i32
    return %c0_i32, %c0_i32_0 : i32, i32
  }
  func.func @transform_2(%arg0: i32) -> (i32, i32) {
    %c0_i32 = arith.constant 0 : i32
    %c0_i32_0 = arith.constant 0 : i32
    %c0_i32_1 = arith.constant 0 : i32
    return %c0_i32, %c0_i32_0 : i32, i32
  }
  func.func @transform_3(%arg0: i32) -> (i32, i32) {
    %c0_i32 = arith.constant 0 : i32
    %c0_i32_0 = arith.constant 0 : i32
    %c0_i32_1 = arith.constant 0 : i32
    return %c0_i32, %c0_i32_0 : i32, i32
  }
  func.func @transform_4(%arg0: i32) -> (i32, i32) {
    %c0_i32 = arith.constant 0 : i32
    %c0_i32_0 = arith.constant 0 : i32
    %c0_i32_1 = arith.constant 0 : i32
    return %c0_i32, %c0_i32_0 : i32, i32
  }
  func.func @transform_5(%arg0: i32) -> (i32, i32) {
    %c0_i32 = arith.constant 0 : i32
    %c0_i32_0 = arith.constant 0 : i32
    %c0_i32_1 = arith.constant 0 : i32
    return %c0_i32, %c0_i32_0 : i32, i32
  }
  func.func @transform_6(%arg0: i32) -> (i32, i32) {
    %c0_i32 = arith.constant 0 : i32
    %c0_i32_0 = arith.constant 0 : i32
    %c0_i32_1 = arith.constant 0 : i32
    return %c0_i32, %c0_i32_0 : i32, i32
  }
  func.func @transform_7(%arg0: i32) -> (i32, i32) {
    %c0_i32 = arith.constant 0 : i32
    %c0_i32_0 = arith.constant 0 : i32
    return %arg0, %c0_i32 : i32, i32
  }
}

</mosaic_0001>

<bundles_post_ra>
// kernel: tpu_custom_call.1
= control target key start
LH: loop header
LB: loop body
LE: loop exit
PB: predicated region body
PF: predicated region fallthrough
CT: control target
= control target key end

     0   :  { %v439_v1 = vmov 0.0   ;;  %vm440_vm0 = vmmov 0   ;;  %vm54_vm1 = vcmask 261120   ;;  %s556_s0 = inlined_call_operand.vmem [shape: f32[16,32], index: 0, kind: input, shape index: {}]   ;;  %s557_s1 = inlined_call_operand.vmem [shape: bf16[32,128], index: 1, kind: input, shape index: {}]   ;;  %s558_s2 = inlined_call_operand.vmem [shape: f32[1,128], index: 2, kind: input, shape index: {}]   ;;  %s559_s3 = inlined_call_operand.vmem [shape: bf16[128,64], index: 3, kind: input, shape index: {}]   ;;  %s560_s4 = inlined_call_operand.vmem [shape: f32[1,64], index: 4, kind: input, shape index: {}]   ;;  %s561_s5 = inlined_call_operand.vmem [shape: bf16[64,16], index: 5, kind: input, shape index: {}]   ;;  %s562_s6 = inlined_call_operand.vmem [shape: f32[1,16], index: 6, kind: input, shape index: {}]   ;;  %s563_s7 = inlined_call_operand.hbm [shape: f32[16,16], index: 7, kind: output, shape index: {}]  }
   0x1   :  { %v401_v0 = vld [vmem:[%s557_s1] sm:$0xff]   ;;  %356 = vmatprep.subr.bf16.mxu0 %v439_v1  ;;  %v402_v2 = vld [vmem:[%s557_s1 + $0x8] sm:$0xff]   ;;  %364 = vmatprep.subr.bf16.mxu1 %v439_v1  ;;  %v405_v8 = vld [vmem:[%s559_s3 + $0x10] sm:$0xff]  }
   0x2   :  { %357 = vmatpush3.bf16.msra.mxu0 %v401_v0  ;;  %360 = vmatprep.mubr.msk.bf16.mxu0 %vm440_vm0, %v439_v1  ;;  %v28_v3 = vld [vmem:[%s556_s0] sm:$0xff]  ;;  %v29_v4 = vld [vmem:[%s556_s0 + $0x8] sm:$0xff]  ;;  %v406_v9 = vld [vmem:[%s559_s3 + $0x18] sm:$0xff]  }
   0x3   :  { %358 = vmatprep.subr.bf16.mxu0 %v439_v1  ;;  %v403_v5 = vld [vmem:[%s559_s3] sm:$0xff]   ;;  %380 = vmatprep.mubr.msk.bf16.mxu1 %vm440_vm0, %v439_v1  ;;  %v30_v6 = vpack.c.bf16 %v29_v4, %v28_v3  ;;  %v404_v7 = vld [vmem:[%s559_s3 + $0x8] sm:$0xff]  }
   0x4   :  { %365 = vmatpush3.bf16.msra.mxu1 %v403_v5 }
   0x5   :  { %366 = vmatprep.subr.bf16.mxu1 %v439_v1 }
   0x6   :  { %359 = vmatpush3.bf16.msra.mxu0 %v402_v2 }
   0x7   :  { %384 = vmatprep.subr.bf16.mxu0 %v439_v1 }
   0x8   :  { %367 = vmatpush3.bf16.msra.mxu1 %v404_v7 }
   0x9   :  { %361 = vmatmul.mubr.msk.bf16.vlgmr.msra.gmra.mrb[0].mxu0 %vm54_vm1, %v30_v6  ;;  %368 = vmatprep.subr.bf16.mxu1 %v439_v1 }
   0xa   :  { %392 = vmatprep.mubr.msk.bf16.mxu0 %vm440_vm0, %v439_v1 }
   0xc   :  { %369 = vmatpush3.bf16.msra.mxu1 %v405_v8 }
   0xd   :  { %12 = vsyncpa [#allocation3], 0  ;;  %370 = vmatprep.subr.bf16.mxu1 %v439_v1  ;;  %v407_v10 = vld [vmem:[%s559_s3 + $0x20] sm:$0xff]   ;;  %v408_v11 = vld [vmem:[%s559_s3 + $0x28] sm:$0xff]   ;;  %vm256_vm2 = vcmask 523264   ;;  %vm301_vm3 = vcmask 130048  }
   0xe   :  { %v409_v12 = vld [vmem:[%s559_s3 + $0x30] sm:$0xff]   ;;  %v410_v13 = vld [vmem:[%s559_s3 + $0x38] sm:$0xff]   ;;  %v411_v14 = vld [vmem:[%s561_s5] sm:$0xff]  }
   0xf   :  { %385 = vmatpush3.bf16.msra.mxu0 %v411_v14  ;;  %v412_v15 = vld [vmem:[%s561_s5 + $0x8] sm:$0xff]   ;;  %v320_v16 = vld [vmem:[%s558_s2] ss:$0 sm:$0xff]  ;;  %v413_v26 = vld [vmem:[%s561_s5 + $0x10] sm:$0xff]  }
  0x10   :  { %371 = vmatpush3.bf16.msra.mxu1 %v406_v9  ;;  %386 = vmatprep.subr.bf16.mxu0 %v439_v1  ;;  %v414_v27 = vld [vmem:[%s561_s5 + $0x18] sm:$0xff]   ;;  %v324_v28 = vld [vmem:[%s560_s4] ss:$0 sm:$0xff]  ;;  %s441_s5 = smov [#allocation2]  }
  0x11   :  { %372 = vmatprep.subr.bf16.mxu1 %v439_v1  ;;  %v333_v38 = vld [vmem:[%s562_s6] ss:$0 sm:$0xff]  ;;  %s309_s11 = sshll.u32 %s441_s5, 4  ;;  %s310_s11 = int_to_ptr.vmem [resolvable:$true] %s309_s11 }
  0x12   :  { %s415_s4 = scalar_lea.vmem %s310_s11, 256  ;;  %p420_p1 = scmp.lt.s32.totalorder %s310_s11, %s310_s11 }
  0x13   :  { %387 = vmatpush3.bf16.msra.mxu0 %v412_v15  ;;  %p416_p0 = scmp.ne.s32.totalorder %s310_s11, %s415_s4  ;;  %p421_p2 = scmp.lt.s32.totalorder %s415_s4, %s415_s4 }
  0x14   :  { %373 = vmatpush3.bf16.msra.mxu1 %v407_v10  ;;  %388 = vmatprep.subr.bf16.mxu0 %v439_v1 }
  0x15   :  { %374 = vmatprep.subr.bf16.mxu1 %v439_v1  ;;  %p422_p3 = por %p421_p2, %p420_p1 }
  0x17   :  { %389 = vmatpush3.bf16.msra.mxu0 %v413_v26  ;;  %p423_p4 = pnand %p422_p3, %p416_p0 }
  0x18   :  { %375 = vmatpush3.bf16.msra.mxu1 %v408_v11  ;;  %390 = vmatprep.subr.bf16.mxu0 %v439_v1 }
  0x19   :  { %376 = vmatprep.subr.bf16.mxu1 %v439_v1 }
  0x1b   :  { %391 = vmatpush3.bf16.msra.mxu0 %v414_v27 }
  0x1c   :  { %377 = vmatpush3.bf16.msra.mxu1 %v409_v12 }
  0x1d   :  { %378 = vmatprep.subr.bf16.mxu1 %v439_v1 }
  0x20   :  { %379 = vmatpush3.bf16.msra.mxu1 %v410_v13 }
  0xdc   :  { %v92_v17 = vpop.f32.mrb[0].mxu0 }
  0xdd   :  { %v93_v18 = vadd.f32 %v320_v16, %v92_v17  ;;  %v362_v19 = vpop.f32.mrb[1].mxu0 }
  0xde   :  { %v95_v20 = vpop.f32.mrb[2].mxu0 }
  0xdf   :  { %v96_v21 = vadd.f32 %v320_v16, %v95_v20  ;;  %v363_v22 = vpop.f32.mrb[3].mxu0  ;;  %v99_v23 = vmax.f32 %v93_v18, 0.0 }
  0xe1   :  { %v100_v24 = vmax.f32 %v96_v21, 0.0 }
  0xe3   :  { %v101_v25 = vpack.c.bf16 %v100_v24, %v99_v23 }
  0xe5   :  { %381 = vmatmul.mubr.bf16.vlgmr.msra.gmra.mrb[0].mxu1 %v101_v25 }
 0x1b8   :  { %v207_v29 = vpop.f32.mrb[0].mxu1 }
 0x1b9   :  { %v208_v30 = vadd.f32 %v324_v28, %v207_v29  ;;  %v382_v31 = vpop.f32.mrb[1].mxu1 }
 0x1ba   :  { %v210_v32 = vpop.f32.mrb[2].mxu1 }
 0x1bb   :  { %v211_v33 = vadd.f32 %v324_v28, %v210_v32  ;;  %v383_v34 = vpop.f32.mrb[3].mxu1  ;;  %v214_v35 = vmax.f32 %v208_v30, 0.0 }
 0x1bd   :  { %v215_v36 = vmax.f32 %v211_v33, 0.0 }
 0x1bf   :  { %v216_v37 = vpack.c.bf16 %v215_v36, %v214_v35 }
 0x1c1   :  { %393 = vmatmul.mubr.msk.bf16.vlgmr.msra.gmra.mrb[4].mxu0 %vm256_vm2, %v216_v37 }
 0x294   :  { %v294_v39 = vpop.f32.mrb[4].mxu0 }
 0x295   :  { %v295_v40 = vadd.f32 %v333_v38, %v294_v39  ;;  %v394_v41 = vpop.f32.mrb[5].mxu0 }
 0x296   :  { %v297_v42 = vpop.f32.mrb[6].mxu0 }
 0x297   :  { %302 = vst.msk [vmem:[#allocation2] sm:$0xff] %vm301_vm3, %v295_v40  ;;  %v298_v43 = vadd.f32 %v333_v38, %v297_v42  ;;  %v395_v44 = vpop.f32.mrb[7].mxu0 }
 0x299   :  { %303 = vst.msk [vmem:[#allocation2 + $0x8] sm:$0xff] %vm301_vm3, %v298_v43 }
 0x29a   :  { %426 = shalt.err (!%p423_p4)
}
 0x29b   :  { %s427_s13 = scalar_lea.hbm %s563_s7, 256 }
 0x29c   :  { %p428_p5 = scmp.ne.s32.totalorder %s563_s7, %s427_s13  ;;  %p431_p6 = scmp.lt.u32.totalorder %s427_s13, %s563_s7 }
 0x29e   :  { %p433_p7 = pnand %p431_p6, %p428_p5 }
 0x2a0   :  { %436 = shalt.err (!%p433_p7)
}
 0x2a1   :  { %s442_s17 = smov 128   ;;  %s443_s18 = smov 8  }
 0x2a2   :  { %315 = dma.vmem_to_hbm [thread:$0]  %s310_s11, 256, %s563_s7, [#allocation3], %s442_s17, %s442_s17, %s443_s18  }
 0x2a3   :  { %437 = dma.done.wait [#allocation3], 256  }
 0x2a4   :  { %438 = vsyncadd [#allocation3], 4294967040 }
 0x2a5   :  { %319 = vsyncpa [#allocation3], 1 }

</bundles_post_ra>
